<compile_context>
chip_gen: v6e
topology: v6e:2x2x1
jax: 0.10.0
libtpu: 0.0.40
codegen_flags: <defaults>
</compile_context>

<pallas_src>
import jax
import jax.numpy as jnp
from jax.experimental import pallas as pl
from jax.experimental.pallas import tpu as pltpu

# Original SamplerHead default is sz=256 (OUT_DIM=131072); kept small here so
# the demo stays tiny while preserving the exact forward-pass semantics.  The
# tiled structure below is what scales to the real size (w3 = 128x131072).
SZ = 16
C_IN = 512
H1 = 256
H2 = 128
OUT_DIM = SZ * SZ * 2


# --------------------------------------------------------------------------
# Kernels
# --------------------------------------------------------------------------
def _pool_mlp_kernel(feat_ref, w1_ref, b1_ref, w2_ref, b2_ref, h2_ref):
    """feat_ref: (N, HW, C) f32 channels-last; w*_ref bf16 (in, out); b*_ref f32 (1, out)."""
    # nn.AdaptiveAvgPool2d((1, 1)) == global mean over the spatial axis.
    pooled = jnp.mean(feat_ref[...], axis=1)                                 # (N, C) f32
    # Linear(512 -> 256) + ReLU   (bf16 operands, f32 accumulation)
    h1 = jnp.dot(pooled.astype(jnp.bfloat16), w1_ref[...],
                 preferred_element_type=jnp.float32) + b1_ref[...]
    h1 = jnp.maximum(h1, 0.0)
    # Linear(256 -> 128) + ReLU
    h2 = jnp.dot(h1.astype(jnp.bfloat16), w2_ref[...],
                 preferred_element_type=jnp.float32) + b2_ref[...]
    h2_ref[...] = jnp.maximum(h2, 0.0)


def _fc3_tile_kernel(h2_ref, w3_ref, b3_ref, out_ref):
    """One (N, H2) @ (H2, TN) tile of the final Linear(128 -> sz*sz*2)."""
    out = jnp.dot(h2_ref[...].astype(jnp.bfloat16), w3_ref[...],
                  preferred_element_type=jnp.float32) + b3_ref[...]
    out_ref[...] = out.astype(out_ref.dtype)


# --------------------------------------------------------------------------
# Wrapper
# --------------------------------------------------------------------------
def sampler_head_forward(feat_nchw, params, *, tile_n=None):
    """feat_nchw: (N, 512, H, W) float32 -> sampling grid (N, SZ, SZ, 2) float32."""
    n, c, h, w = feat_nchw.shape
    assert c == C_IN
    w1t, b1, w2t, b2, w3t, b3 = params
    out_dim = w3t.shape[1]
    sz = int(round((out_dim // 2) ** 0.5))

    # Channels-last so feat loads are lane-dense (C=512 = 4 x 128 lanes).
    feat = feat_nchw.reshape(n, c, h * w).transpose(0, 2, 1)                 # (N, HW, C)

    def full_spec(shape):
        nd = len(shape)
        return pl.BlockSpec(shape, lambda i, _nd=nd: (0,) * _nd)

    # ---- Stage 1: pool + fc1 + fc2, computed once (tiny) -------------------
    h2 = pl.pallas_call(
        _pool_mlp_kernel,
        out_shape=jax.ShapeDtypeStruct((n, H2), jnp.float32),
        grid=(1,),
        in_specs=[
            full_spec(feat.shape),
            full_spec(w1t.shape), full_spec(b1.shape),
            full_spec(w2t.shape), full_spec(b2.shape),
        ],
        out_specs=full_spec((n, H2)),
        compiler_params=pltpu.CompilerParams(
            dimension_semantics=("arbitrary",)),
    )(feat, w1t, b1, w2t, b2)

    # ---- Stage 2: fc3 tiled over the output dimension ----------------------
    if tile_n is None:
        tile_n = min(8192, out_dim)        # real size (SZ=256): 128x8192 bf16 = 2 MiB/tile
    while out_dim % tile_n != 0:
        tile_n -= 128
    assert tile_n >= 128 and tile_n % 128 == 0 and out_dim % tile_n == 0
    num_tiles = out_dim // tile_n

    w3_bytes = int(w3t.size) * w3t.dtype.itemsize
    b3_bytes = int(b3.size) * b3.dtype.itemsize
    out_bytes = n * out_dim * 4
    cost = pl.CostEstimate(
        flops=2 * n * H2 * out_dim,
        transcendentals=0,
        bytes_accessed=w3_bytes + b3_bytes + out_bytes + n * H2 * 4)

    # Explicit VMEM budget: double-buffered (w3, b3, out) tiles + resident h2.
    tile_vmem = 2 * (H2 * tile_n * w3t.dtype.itemsize
                     + tile_n * b3.dtype.itemsize
                     + n * tile_n * 4) + n * H2 * 4
    vmem_limit = int(min(max(2 * tile_vmem, 4 << 20), 48 << 20))

    out = pl.pallas_call(
        _fc3_tile_kernel,
        out_shape=jax.ShapeDtypeStruct((n, out_dim), jnp.float32),
        grid=(num_tiles,),
        in_specs=[
            pl.BlockSpec((n, H2), lambda j: (0, 0)),       # h2: constant tiny block
            pl.BlockSpec((H2, tile_n), lambda j: (0, j)),  # w3: streamed, double-buffered
            pl.BlockSpec((1, tile_n), lambda j: (0, j)),   # b3 tile
        ],
        out_specs=pl.BlockSpec((n, tile_n), lambda j: (0, j)),  # lane-dense output tiles
        compiler_params=pltpu.CompilerParams(
            dimension_semantics=("parallel",),             # shard tiles across v7x's 2 TCs
            vmem_limit_bytes=vmem_limit),
        cost_estimate=cost,
    )(h2, w3t, b3)

    # Same reshaping as the PyTorch forward.
    xx = out[:, :sz * sz].reshape(n, sz, sz)
    yy = out[:, sz * sz:sz * sz * 2].reshape(n, sz, sz)
    return jnp.stack((xx, yy), axis=3)                                        # (N, SZ, SZ, 2)


# --------------------------------------------------------------------------
# Parameters
# --------------------------------------------------------------------------
def make_params(key, sz=SZ):
    """Deterministic parameter init mirroring SamplerHead.initialize()."""
    out_dim = sz * sz * 2
    k1, k2 = jax.random.split(key, 2)

    def xavier_uniform(k, out_f, in_f):
        bound = (6.0 / (in_f + out_f)) ** 0.5
        return jax.random.uniform(k, (out_f, in_f), jnp.float32, -bound, bound)

    w1 = xavier_uniform(k1, H1, C_IN)            # torch Linear weight layout (out, in)
    w2 = xavier_uniform(k2, H2, H1)
    w3 = jnp.zeros((out_dim, H2), jnp.float32)   # loc[4].weight.data.zero_()

    b1 = jnp.zeros((1, H1), jnp.float32)
    b2 = jnp.zeros((1, H2), jnp.float32)
    # loc[4].bias = affine_grid(identity theta, align_corners=True) coords, X then Y.
    lin = jnp.linspace(-1.0, 1.0, sz, dtype=jnp.float32)
    X = jnp.tile(lin, sz)      # x varies along width (fastest index)
    Y = jnp.repeat(lin, sz)    # y varies along height
    b3 = jnp.concatenate([X, Y])[None, :]                                     # (1, out_dim)

    # Pre-transpose to (in, out) and cast weights to bf16 (halves w3 HBM traffic).
    return (w1.T.astype(jnp.bfloat16), b1,
            w2.T.astype(jnp.bfloat16), b2,
            w3.T.astype(jnp.bfloat16), b3)


def make_random_params(key, sz=SZ):
    """Random (non-zero fc3) parameters to exercise the tiled matmul path."""
    out_dim = sz * sz * 2
    k1, k2, k3, k4, k5, k6 = jax.random.split(key, 6)
    w1 = jax.random.normal(k1, (H1, C_IN), jnp.float32) * 0.05
    w2 = jax.random.normal(k2, (H2, H1), jnp.float32) * 0.05
    w3 = jax.random.normal(k3, (out_dim, H2), jnp.float32) * 0.05
    b1 = jax.random.normal(k4, (1, H1), jnp.float32) * 0.1
    b2 = jax.random.normal(k5, (1, H2), jnp.float32) * 0.1
    b3 = jax.random.normal(k6, (1, out_dim), jnp.float32) * 0.1
    return (w1.T.astype(jnp.bfloat16), b1,
            w2.T.astype(jnp.bfloat16), b2,
            w3.T.astype(jnp.bfloat16), b3)


def reference_forward(feat_nchw, params):
    """Pure-JAX reference of SamplerHead.forward (same bf16 weight rounding)."""
    w1t, b1, w2t, b2, w3t, b3 = params
    n = feat_nchw.shape[0]
    out_dim = w3t.shape[1]
    sz = int(round((out_dim // 2) ** 0.5))
    f32, bf16 = jnp.float32, jnp.bfloat16
    pooled = feat_nchw.reshape(n, C_IN, -1).mean(axis=-1)
    h1 = jnp.maximum(pooled.astype(bf16).astype(f32) @ w1t.astype(f32) + b1, 0.0)
    h2 = jnp.maximum(h1.astype(bf16).astype(f32) @ w2t.astype(f32) + b2, 0.0)
    out = h2.astype(bf16).astype(f32) @ w3t.astype(f32) + b3
    xx = out[:, :sz * sz].reshape(n, sz, sz)
    yy = out[:, sz * sz:].reshape(n, sz, sz)
    return jnp.stack((xx, yy), axis=3)


# --------------------------------------------------------------------------
# Demo / checks
# --------------------------------------------------------------------------
if __name__ == "__main__":
    key = jax.random.PRNGKey(0)
    k_feat, k_params, k_rand = jax.random.split(key, 3)

    # Deepest encoder feature (features[-1]) of ResNet18: (N, 512, H, W).
    feat = jax.random.normal(k_feat, (2, C_IN, 8, 8), dtype=jnp.float32)

    # 1) Real module init (zero fc3 weight, identity affine-grid bias).
    params = make_params(k_params)
    grid = jax.block_until_ready(sampler_head_forward(feat, params, tile_n=128))
    assert grid.shape == (2, SZ, SZ, 2), grid.shape
    ref = reference_forward(feat, params)
    assert jnp.allclose(grid, ref, atol=1e-5, rtol=1e-5)
    lin = jnp.linspace(-1.0, 1.0, SZ, dtype=jnp.float32)
    ident = jnp.stack(
        (jnp.broadcast_to(lin[None, :], (SZ, SZ)),
         jnp.broadcast_to(lin[:, None], (SZ, SZ))), axis=2)
    assert jnp.allclose(grid, ident[None], atol=1e-5)

    # 2) Random (non-zero) weights: exercises the tiled fc3 matmul for real.
    rparams = make_random_params(k_rand)
    grid_r = jax.block_until_ready(sampler_head_forward(feat, rparams, tile_n=128))
    ref_r = reference_forward(feat, rparams)
    assert jnp.allclose(grid_r, ref_r, atol=2e-3, rtol=2e-3), (
        float(jnp.max(jnp.abs(grid_r - ref_r))))

    print("KERNEL_OK")
</pallas_src>

<mosaic_0001>
module attributes {stable_mosaic.version = 11 : i64} {
  func.func @_pool_mlp_kernel(%arg0: i32, %arg1: memref<2x64x512xf32, #tpu.memory_space<vmem>>, %arg2: memref<512x256xbf16, #tpu.memory_space<vmem>>, %arg3: memref<1x256xf32, #tpu.memory_space<vmem>>, %arg4: memref<256x128xbf16, #tpu.memory_space<vmem>>, %arg5: memref<1x128xf32, #tpu.memory_space<vmem>>, %arg6: memref<2x128xf32, #tpu.memory_space<vmem>>) attributes {dimension_semantics = [#tpu.dimension_semantics<arbitrary>], iteration_bounds = array<i64: 1>, scalar_prefetch = 0 : i64, scratch_operands = 0 : i64, tpu.core_type = #tpu.core_type<tc>, window_params = [{pipeline_mode = #tpu.pipeline_mode<synchronous>, transform_indices = @transform_0, window_bounds = array<i64: 2, 64, 512>}, {pipeline_mode = #tpu.pipeline_mode<synchronous>, transform_indices = @transform_1, window_bounds = array<i64: 512, 256>}, {pipeline_mode = #tpu.pipeline_mode<synchronous>, transform_indices = @transform_2, window_bounds = array<i64: 1, 256>}, {pipeline_mode = #tpu.pipeline_mode<synchronous>, transform_indices = @transform_3, window_bounds = array<i64: 256, 128>}, {pipeline_mode = #tpu.pipeline_mode<synchronous>, transform_indices = @transform_4, window_bounds = array<i64: 1, 128>}, {pipeline_mode = #tpu.pipeline_mode<synchronous>, transform_indices = @transform_5, window_bounds = array<i64: 2, 128>}]} {
    %c0 = arith.constant 0 : index
    %c0_0 = arith.constant 0 : index
    %c0_1 = arith.constant 0 : index
    %0 = vector.load %arg1[%c0, %c0_0, %c0_1] : memref<2x64x512xf32, #tpu.memory_space<vmem>>, vector<2x64x512xf32>
    %cst = arith.constant dense<0.000000e+00> : vector<2x512xf32>
    %1 = vector.multi_reduction <add>, %0, %cst [1] : vector<2x64x512xf32> to vector<2x512xf32>
    %cst_2 = arith.constant 6.400000e+01 : f32
    %2 = vector.broadcast %cst_2 : f32 to vector<2x512xf32>
    %3 = arith.divf %1, %2 : vector<2x512xf32>
    %4 = arith.truncf %3 : vector<2x512xf32> to vector<2x512xbf16>
    %c0_3 = arith.constant 0 : index
    %c0_4 = arith.constant 0 : index
    %5 = vector.load %arg2[%c0_3, %c0_4] : memref<512x256xbf16, #tpu.memory_space<vmem>>, vector<512x256xbf16>
    %cst_5 = arith.constant dense<0.000000e+00> : vector<2x256xf32>
    %6 = tpu.matmul %4, %5, %cst_5 {dimension_numbers = #tpu.dot_dimension_numbers<[1], [0], [0], [1], [0, 0, 1, 1], [], []>} : vector<2x512xbf16>, vector<512x256xbf16>, vector<2x256xf32> -> vector<2x256xf32>
    %c0_6 = arith.constant 0 : index
    %c0_7 = arith.constant 0 : index
    %7 = vector.load %arg3[%c0_6, %c0_7] : memref<1x256xf32, #tpu.memory_space<vmem>>, vector<1x256xf32>
    %8 = vector.broadcast %7 : vector<1x256xf32> to vector<2x256xf32>
    %9 = arith.addf %6, %8 : vector<2x256xf32>
    %cst_8 = arith.constant 0.000000e+00 : f32
    %10 = vector.broadcast %cst_8 : f32 to vector<2x256xf32>
    %11 = arith.maximumf %9, %10 : vector<2x256xf32>
    %12 = arith.truncf %11 : vector<2x256xf32> to vector<2x256xbf16>
    %c0_9 = arith.constant 0 : index
    %c0_10 = arith.constant 0 : index
    %13 = vector.load %arg4[%c0_9, %c0_10] : memref<256x128xbf16, #tpu.memory_space<vmem>>, vector<256x128xbf16>
    %cst_11 = arith.constant dense<0.000000e+00> : vector<2x128xf32>
    %14 = tpu.matmul %12, %13, %cst_11 {dimension_numbers = #tpu.dot_dimension_numbers<[1], [0], [0], [1], [0, 0, 1, 1], [], []>} : vector<2x256xbf16>, vector<256x128xbf16>, vector<2x128xf32> -> vector<2x128xf32>
    %c0_12 = arith.constant 0 : index
    %c0_13 = arith.constant 0 : index
    %15 = vector.load %arg5[%c0_12, %c0_13] : memref<1x128xf32, #tpu.memory_space<vmem>>, vector<1x128xf32>
    %16 = vector.broadcast %15 : vector<1x128xf32> to vector<2x128xf32>
    %17 = arith.addf %14, %16 : vector<2x128xf32>
    %cst_14 = arith.constant 0.000000e+00 : f32
    %18 = vector.broadcast %cst_14 : f32 to vector<2x128xf32>
    %19 = arith.maximumf %17, %18 : vector<2x128xf32>
    %c0_15 = arith.constant 0 : index
    %c0_16 = arith.constant 0 : index
    %20 = vector.load %arg6[%c0_15, %c0_16] : memref<2x128xf32, #tpu.memory_space<vmem>>, vector<2x128xf32>
    tpu.vector_store %arg6[%c0_15, %c0_16], %19 {strides = array<i32>} : memref<2x128xf32, #tpu.memory_space<vmem>>, vector<2x128xf32>,
    return
  }
  func.func @transform_0(%arg0: i32) -> (i32, i32, i32) {
    %c0_i32 = arith.constant 0 : i32
    %c0_i32_0 = arith.constant 0 : i32
    %c0_i32_1 = arith.constant 0 : i32
    %c0_i32_2 = arith.constant 0 : i32
    return %c0_i32, %c0_i32_0, %c0_i32_1 : i32, i32, i32
  }
  func.func @transform_1(%arg0: i32) -> (i32, i32) {
    %c0_i32 = arith.constant 0 : i32
    %c0_i32_0 = arith.constant 0 : i32
    %c0_i32_1 = arith.constant 0 : i32
    return %c0_i32, %c0_i32_0 : i32, i32
  }
  func.func @transform_2(%arg0: i32) -> (i32, i32) {
    %c0_i32 = arith.constant 0 : i32
    %c0_i32_0 = arith.constant 0 : i32
    %c0_i32_1 = arith.constant 0 : i32
    return %c0_i32, %c0_i32_0 : i32, i32
  }
  func.func @transform_3(%arg0: i32) -> (i32, i32) {
    %c0_i32 = arith.constant 0 : i32
    %c0_i32_0 = arith.constant 0 : i32
    %c0_i32_1 = arith.constant 0 : i32
    return %c0_i32, %c0_i32_0 : i32, i32
  }
  func.func @transform_4(%arg0: i32) -> (i32, i32) {
    %c0_i32 = arith.constant 0 : i32
    %c0_i32_0 = arith.constant 0 : i32
    %c0_i32_1 = arith.constant 0 : i32
    return %c0_i32, %c0_i32_0 : i32, i32
  }
  func.func @transform_5(%arg0: i32) -> (i32, i32) {
    %c0_i32 = arith.constant 0 : i32
    %c0_i32_0 = arith.constant 0 : i32
    %c0_i32_1 = arith.constant 0 : i32
    return %c0_i32, %c0_i32_0 : i32, i32
  }
}

</mosaic_0001>

<bundles_post_ra>
// kernel: tpu_custom_call.1
= control target key start
LH: loop header
LB: loop body
LE: loop exit
PB: predicated region body
PF: predicated region fallthrough
CT: control target
= control target key end

     0   :  { %10 = vsyncpa [#allocation3], 0  ;;  %s1325_s0 = inlined_call_operand.hbm [shape: f32[2,64,512], index: 0, kind: input, shape index: {}]   ;;  %s1326_s1 = inlined_call_operand.hbm [shape: bf16[512,256], index: 1, kind: input, shape index: {}]   ;;  %s1327_s2 = inlined_call_operand.vmem [shape: f32[1,256], index: 2, kind: input, shape index: {}]   ;;  %s1328_s3 = inlined_call_operand.hbm [shape: bf16[256,128], index: 3, kind: input, shape index: {}]   ;;  %s1329_s4 = inlined_call_operand.vmem [shape: f32[1,128], index: 4, kind: input, shape index: {}]   ;;  %s1330_s5 = inlined_call_operand.hbm [shape: f32[2,128], index: 5, kind: output, shape index: {}]  }
   0x1   :  { %11 = vsyncpa [#allocation6], 0 }
   0x2   :  { %12 = vsyncpa [#allocation4], 0  ;;  %s1263_s18 = smov [#allocation5]  }
   0x3   :  { %s30_s19 = sshll.u32 %s1263_s18, 4  ;;  %s31_s19 = int_to_ptr.vmem [resolvable:$true] %s30_s19 }
   0x4   :  { %s1185_s20 = scalar_lea.vmem %s31_s19, 8192  ;;  %p1190_p1 = scmp.lt.s32.totalorder %s31_s19, %s31_s19 }
   0x5   :  { %p1186_p0 = scmp.ne.s32.totalorder %s31_s19, %s1185_s20  ;;  %p1191_p2 = scmp.lt.s32.totalorder %s1185_s20, %s1185_s20 }
   0x7   :  { %p1192_p3 = por %p1191_p2, %p1190_p1 }
   0x9   :  { %p1193_p4 = pnand %p1192_p3, %p1186_p0 }
   0xb   :  { %1196 = shalt.err (!%p1193_p4)
}
   0xc   :  { %s1264_s21 = smov 128   ;;  %s1265_s22 = smov 8  }
   0xd   :  { %36 = dma.hbm_to_vmem [thread:$0]  %s1326_s1, 8192, %s31_s19, [#allocation6], %s1264_s21, %s1264_s21, %s1265_s22  }
   0xe   :  { %s1266_s25 = smov [#allocation2]  }
   0xf   :  { %s18_s26 = sshll.u32 %s1266_s25, 4  ;;  %s19_s26 = int_to_ptr.vmem [resolvable:$true] %s18_s26 }
  0x10   :  { %s1205_s27 = scalar_lea.vmem %s19_s26, 8192  ;;  %p1210_p6 = scmp.lt.s32.totalorder %s19_s26, %s19_s26 }
  0x11   :  { %p1206_p5 = scmp.ne.s32.totalorder %s19_s26, %s1205_s27  ;;  %p1211_p7 = scmp.lt.s32.totalorder %s1205_s27, %s1205_s27 }
  0x13   :  { %p1212_p8 = por %p1211_p7, %p1210_p6 }
  0x15   :  { %p1213_p9 = pnand %p1212_p8, %p1206_p5 }
  0x17   :  { %1216 = shalt.err (!%p1213_p9)
}
  0x18   :  { %s1267_s28 = smov 512   ;;  %s1268_s29 = smov 32  }
  0x19   :  { %24 = dma.hbm_to_vmem [thread:$0]  %s1325_s0, 8192, %s19_s26, [#allocation3], %s1267_s28, %s1267_s28, %s1268_s29  }
  0x1a   :  { %s1269_s7 = smov [#allocation7]  }
  0x1b   :  { %s44_s8 = sshll.u32 %s1269_s7, 4  ;;  %s45_s8 = int_to_ptr.vmem [resolvable:$true] %s44_s8 }
  0x1c   :  { %s1225_s1 = scalar_lea.vmem %s45_s8, 2048  ;;  %p1230_p11 = scmp.lt.s32.totalorder %s45_s8, %s45_s8 }
  0x1d   :  { %p1226_p10 = scmp.ne.s32.totalorder %s45_s8, %s1225_s1  ;;  %p1231_p12 = scmp.lt.s32.totalorder %s1225_s1, %s1225_s1 }
  0x1f   :  { %p1232_p13 = por %p1231_p12, %p1230_p11 }
  0x21   :  { %p1233_p0 = pnand %p1232_p13, %p1226_p10 }
  0x23   :  { %1236 = shalt.err (!%p1233_p0)
}
  0x24   :  { %s1270_s9 = smov 64   ;;  %s1271_s10 = smov 4  }
  0x25   :  { %50 = dma.hbm_to_vmem [thread:$0]  %s1328_s3, 2048, %s45_s8, [#allocation6], %s1270_s9, %s1270_s9, %s1271_s10  }
  0x26   :  { %1257 = dma.done.wait [#allocation3], 8192  }
  0x27   :  { %1258 = vsyncadd [#allocation3], 4294959104 }
  0x28   :  { %1259 = dma.done.wait [#allocation6], 10240  }
  0x29   :  { %1260 = vsyncadd [#allocation6], 4294957056  ;;  %v1065_v0 = vld [vmem:[#allocation5 + $0x74] ss:$8 sps:$4 sm:$0xff]   ;;  %v1069_v2 = vld [vmem:[#allocation5 + $0x70] ss:$8 sps:$4 sm:$0xff]  }
  0x2a   :  { %v1067_v1 = vld [vmem:[#allocation5 + $0x174] ss:$8 sps:$4 sm:$0xff]   ;;  %673 = vmatprep.subr.bf16.mxu0 %v1065_v0  ;;  %v1070_v3 = vld [vmem:[#allocation5 + $0x170] ss:$8 sps:$4 sm:$0xff]   ;;  %v1071_v4 = vld [vmem:[#allocation5 + $0x64] ss:$8 sps:$4 sm:$0xff]  }
  0x2b   :  { %714 = vmatprep.subr.bf16.mxu1 %v1067_v1  ;;  %674 = vmatpush1.bf16.msra.mxu0 %v1069_v2  ;;  %v1073_v5 = vld [vmem:[#allocation5 + $0x164] ss:$8 sps:$4 sm:$0xff]   ;;  %v1075_v6 = vld [vmem:[#allocation5 + $0x60] ss:$8 sps:$4 sm:$0xff]   ;;  %v1077_v8 = vld [vmem:[#allocation5 + $0x54] ss:$8 sps:$4 sm:$0xff]  }
  0x2c   :  { %715 = vmatpush1.bf16.msra.mxu1 %v1070_v3  ;;  %675 = vmatprep.subr.bf16.mxu0 %v1071_v4  ;;  %v1076_v7 = vld [vmem:[#allocation5 + $0x160] ss:$8 sps:$4 sm:$0xff]   ;;  %v1079_v9 = vld [vmem:[#allocation5 + $0x154] ss:$8 sps:$4 sm:$0xff]   ;;  %v1081_v10 = vld [vmem:[#allocation5 + $0x50] ss:$8 sps:$4 sm:$0xff]  }
  0x2d   :  { %716 = vmatprep.subr.bf16.mxu1 %v1073_v5  ;;  %v1082_v11 = vld [vmem:[#allocation5 + $0x150] ss:$8 sps:$4 sm:$0xff]   ;;  %v1083_v12 = vld [vmem:[#allocation5 + $0x44] ss:$8 sps:$4 sm:$0xff]   ;;  %v1087_v14 = vld [vmem:[#allocation5 + $0x40] ss:$8 sps:$4 sm:$0xff]  }
  0x2e   :  { %v1085_v13 = vld [vmem:[#allocation5 + $0x144] ss:$8 sps:$4 sm:$0xff]   ;;  %v1088_v15 = vld [vmem:[#allocation5 + $0x140] ss:$8 sps:$4 sm:$0xff]   ;;  %v1089_v16 = vld [vmem:[#allocation5 + $0x34] ss:$8 sps:$4 sm:$0xff]  }
  0x2f   :  { %676 = vmatpush1.bf16.msra.mxu0 %v1075_v6  ;;  %v1091_v17 = vld [vmem:[#allocation5 + $0x134] ss:$8 sps:$4 sm:$0xff]   ;;  %v1093_v18 = vld [vmem:[#allocation5 + $0x30] ss:$8 sps:$4 sm:$0xff]   ;;  %v1095_v20 = vld [vmem:[#allocation5 + $0x24] ss:$8 sps:$4 sm:$0xff]  }
  0x30   :  { %717 = vmatpush1.bf16.msra.mxu1 %v1076_v7  ;;  %677 = vmatprep.subr.bf16.mxu0 %v1077_v8  ;;  %v1094_v19 = vld [vmem:[#allocation5 + $0x130] ss:$8 sps:$4 sm:$0xff]   ;;  %v1097_v21 = vld [vmem:[#allocation5 + $0x124] ss:$8 sps:$4 sm:$0xff]   ;;  %v1099_v22 = vld [vmem:[#allocation5 + $0x20] ss:$8 sps:$4 sm:$0xff]  }
  0x31   :  { %718 = vmatprep.subr.bf16.mxu1 %v1079_v9  ;;  %v1100_v23 = vld [vmem:[#allocation5 + $0x120] ss:$8 sps:$4 sm:$0xff]   ;;  %v1101_v24 = vld [vmem:[#allocation5 + $0x14] ss:$8 sps:$4 sm:$0xff]   ;;  %v1105_v26 = vld [vmem:[#allocation5 + $0x10] ss:$8 sps:$4 sm:$0xff]  }
  0x32   :  { %v1103_v25 = vld [vmem:[#allocation5 + $0x114] ss:$8 sps:$4 sm:$0xff]   ;;  %v1106_v27 = vld [vmem:[#allocation5 + $0x110] ss:$8 sps:$4 sm:$0xff]   ;;  %v1107_v28 = vld [vmem:[#allocation5 + $0x4] ss:$8 sps:$4 sm:$0xff]  }
  0x33   :  { %678 = vmatpush1.bf16.msra.mxu0 %v1081_v10  ;;  %v1109_v29 = vld [vmem:[#allocation5 + $0x104] ss:$8 sps:$4 sm:$0xff]   ;;  %v1111_v30 = vld [vmem:[#allocation5] ss:$8 sps:$4 sm:$0xff]   ;;  %v1113_v32 = vld [vmem:[#allocation5 + $0xf4] ss:$8 sps:$4 sm:$0xff]  }
  0x34   :  { %719 = vmatpush1.bf16.msra.mxu1 %v1082_v11  ;;  %679 = vmatprep.subr.bf16.mxu0 %v1083_v12  ;;  %v1112_v31 = vld [vmem:[#allocation5 + $0x100] ss:$8 sps:$4 sm:$0xff]   ;;  %v1115_v33 = vld [vmem:[#allocation5 + $0x1f4] ss:$8 sps:$4 sm:$0xff]   ;;  %v1117_v34 = vld [vmem:[#allocation5 + $0xf0] ss:$8 sps:$4 sm:$0xff]  }
  0x35   :  { %720 = vmatprep.subr.bf16.mxu1 %v1085_v13  ;;  %v1118_v35 = vld [vmem:[#allocation5 + $0x1f0] ss:$8 sps:$4 sm:$0xff]   ;;  %v1119_v36 = vld [vmem:[#allocation5 + $0xe4] ss:$8 sps:$4 sm:$0xff]   ;;  %v1123_v38 = vld [vmem:[#allocation5 + $0xe0] ss:$8 sps:$4 sm:$0xff]  }
  0x36   :  { %v1121_v37 = vld [vmem:[#allocation5 + $0x1e4] ss:$8 sps:$4 sm:$0xff]   ;;  %v1124_v39 = vld [vmem:[#allocation5 + $0x1e0] ss:$8 sps:$4 sm:$0xff]   ;;  %v1125_v40 = vld [vmem:[#allocation5 + $0xd4] ss:$8 sps:$4 sm:$0xff]  }
  0x37   :  { %680 = vmatpush1.bf16.msra.mxu0 %v1087_v14  ;;  %v1127_v41 = vld [vmem:[#allocation5 + $0x1d4] ss:$8 sps:$4 sm:$0xff]   ;;  %v1129_v42 = vld [vmem:[#allocation5 + $0xd0] ss:$8 sps:$4 sm:$0xff]   ;;  %v1131_v44 = vld [vmem:[#allocation5 + $0xc4] ss:$8 sps:$4 sm:$0xff]  }
  0x38   :  { %721 = vmatpush1.bf16.msra.mxu1 %v1088_v15  ;;  %681 = vmatprep.subr.bf16.mxu0 %v1089_v16  ;;  %v1130_v43 = vld [vmem:[#allocation5 + $0x1d0] ss:$8 sps:$4 sm:$0xff]   ;;  %v1133_v45 = vld [vmem:[#allocation5 + $0x1c4] ss:$8 sps:$4 sm:$0xff]   ;;  %v1135_v47 = vld [vmem:[#allocation5 + $0xc0] ss:$8 sps:$4 sm:$0xff]  }
  0x39   :  { %722 = vmatprep.subr.bf16.mxu1 %v1091_v17  ;;  %v64_v46 = vld [vmem:[#allocation2 + $0x8] sm:$0xff]  ;;  %v1137_v51 = vld [vmem:[#allocation5 + $0xb4] ss:$8 sps:$4 sm:$0xff]   ;;  %v1141_v57 = vld [vmem:[#allocation5 + $0xb0] ss:$8 sps:$4 sm:$0xff]   ;;  %vm340_vm0 = vcmask 1041409  }
  0x3a   :  { %v68_v48 = vld [vmem:[#allocation2 + $0x28] sm:$0xff]  ;;  %v1139_v52 = vld [vmem:[#allocation5 + $0x1b4] ss:$8 sps:$4 sm:$0xff]   ;;  %v1142_v58 = vld [vmem:[#allocation5 + $0x1b0] ss:$8 sps:$4 sm:$0xff]   ;;  %s1272_s14 = smov [#allocation8]  }
  0x3b   :  { %682 = vmatpush1.bf16.msra.mxu0 %v1093_v18  ;;  %v72_v49 = vld [vmem:[#allocation2 + $0x48] sm:$0xff]  ;;  %v140_v53 = vadd.f32 %v68_v48, %v64_v46  ;;  %v66_v3 = vld [vmem:[#allocation2 + $0x18] sm:$0xff]  ;;  %s942_s15 = sshll.u32 %s1272_s14, 4  ;;  %s943_s15 = int_to_ptr.vmem [resolvable:$true] %s942_s15 }
  0x3c   :  { %723 = vmatpush1.bf16.msra.mxu1 %v1094_v19  ;;  %683 = vmatprep.subr.bf16.mxu0 %v1095_v20  ;;  %v1136_v50 = vld [vmem:[#allocation5 + $0x1c0] ss:$8 sps:$4 sm:$0xff]   ;;  %v1143_v62 = vld [vmem:[#allocation5 + $0xa4] ss:$8 sps:$4 sm:$0xff]   ;;  %v70_v4 = vld [vmem:[#allocation2 + $0x38] sm:$0xff]  ;;  %s1237_s16 = scalar_lea.vmem %s943_s15, 32  ;;  %p1242_p2 = scmp.lt.s32.totalorder %s943_s15, %s943_s15 }
  0x3d   :  { %724 = vmatprep.subr.bf16.mxu1 %v1097_v21  ;;  %v76_v54 = vld [vmem:[#allocation2 + $0x68] sm:$0xff]  ;;  %v141_v60 = vadd.f32 %v140_v53, %v72_v49  ;;  %v74_v5 = vld [vmem:[#allocation2 + $0x58] sm:$0xff]  ;;  %v166_v9 = vadd.f32 %v70_v4, %v66_v3  ;;  %v103_v53 = vld [vmem:[#allocation2 + $0x140] sm:$0xff]  ;;  %p1238_p1 = scmp.ne.s32.totalorder %s943_s15, %s1237_s16  ;;  %p1243_p3 = scmp.lt.s32.totalorder %s1237_s16, %s1237_s16 }
  0x3e   :  { %v96_v55 = vld [vmem:[#allocation2 + $0x108] sm:$0xff]  ;;  %v78_v15 = vld [vmem:[#allocation2 + $0x78] sm:$0xff]  ;;  %v65_v3 = vld [vmem:[#allocation2 + $0x10] sm:$0xff] }
  0x3f   :  { %684 = vmatpush1.bf16.msra.mxu0 %v1099_v22  ;;  %v100_v56 = vld [vmem:[#allocation2 + $0x128] sm:$0xff]  ;;  %v142_v1 = vadd.f32 %v141_v60, %v76_v54  ;;  %v98_v16 = vld [vmem:[#allocation2 + $0x118] sm:$0xff]  ;;  %v167_v22 = vadd.f32 %v166_v9, %v74_v5  ;;  %v73_v9 = vld [vmem:[#allocation2 + $0x50] sm:$0xff]  ;;  %p1244_p4 = por %p1243_p3, %p1242_p2 }
  0x40   :  { %725 = vmatpush1.bf16.msra.mxu1 %v1100_v23  ;;  %685 = vmatprep.subr.bf16.mxu0 %v1101_v24  ;;  %v104_v59 = vld [vmem:[#allocation2 + $0x148] sm:$0xff]  ;;  %v192_v61 = vadd.f32 %v100_v56, %v96_v55  ;;  %v1149_v17 = vld [vmem:[#allocation5 + $0x94] ss:$8 sps:$4 sm:$0xff]  }
  0x41   :  { %726 = vmatprep.subr.bf16.mxu1 %v1103_v25  ;;  %v80_v63 = vld [vmem:[#allocation2 + $0x88] sm:$0xff]  ;;  %v1151_v18 = vld [vmem:[#allocation5 + $0x194] ss:$8 sps:$4 sm:$0xff]   ;;  %p1245_p5 = pnand %p1244_p4, %p1238_p1 }
  0x42   :  { %v108_v0 = vld [vmem:[#allocation2 + $0x168] sm:$0xff]  ;;  %v193_v2 = vadd.f32 %v192_v61, %v104_v59  ;;  %v143_v13 = vadd.f32 %v142_v1, %v80_v63  ;;  %v102_v20 = vld [vmem:[#allocation2 + $0x138] sm:$0xff]  ;;  %v79_v1 = vld [vmem:[#allocation2 + $0x80] sm:$0xff] }
  0x43   :  { %686 = vmatpush1.bf16.msra.mxu0 %v1105_v26  ;;  %v1145_v6 = vld [vmem:[#allocation5 + $0x1a4] ss:$8 sps:$4 sm:$0xff]   ;;  %v1147_v10 = vld [vmem:[#allocation5 + $0xa0] ss:$8 sps:$4 sm:$0xff]   ;;  %v106_v21 = vld [vmem:[#allocation2 + $0x158] sm:$0xff] }
  0x44   :  { %727 = vmatpush1.bf16.msra.mxu1 %v1106_v27  ;;  %687 = vmatprep.subr.bf16.mxu0 %v1107_v28  ;;  %v84_v7 = vld [vmem:[#allocation2 + $0xa8] sm:$0xff]  ;;  %v194_v14 = vadd.f32 %v193_v2, %v108_v0  ;;  %v82_v27 = vld [vmem:[#allocation2 + $0x98] sm:$0xff]  ;;  %v218_v28 = vadd.f32 %v102_v20, %v98_v16  ;;  %v107_v2 = vld [vmem:[#allocation2 + $0x160] sm:$0xff] }
  0x45   :  { %728 = vmatprep.subr.bf16.mxu1 %v1109_v29  ;;  %v112_v8 = vld [vmem:[#allocation2 + $0x188] sm:$0xff]  ;;  %v144_v25 = vadd.f32 %v143_v13, %v84_v7  ;;  %v110_v29 = vld [vmem:[#allocation2 + $0x178] sm:$0xff]  ;;  %v83_v13 = vld [vmem:[#allocation2 + $0xa0] sm:$0xff] }
  0x46   :  { %v1148_v11 = vld [vmem:[#allocation5 + $0x1a0] ss:$8 sps:$4 sm:$0xff]   ;;  %v195_v26 = vadd.f32 %v194_v14, %v112_v8  ;;  %v94_v54 = vld [vmem:[#allocation2 + $0xf8] sm:$0xff]  ;;  %v69_v8 = vld [vmem:[#allocation2 + $0x30] sm:$0xff] }
  0x47   :  { %688 = vmatpush1.bf16.msra.mxu0 %v1111_v30  ;;  %v88_v12 = vld [vmem:[#allocation2 + $0xc8] sm:$0xff]  ;;  %v168_v30 = vadd.f32 %v167_v22, %v78_v15  ;;  %v118_v55 = vld [vmem:[#allocation2 + $0x1b8] sm:$0xff]  ;;  %v87_v14 = vld [vmem:[#allocation2 + $0xc0] sm:$0xff]  ;;  %v153_v16 = vadd.f32 %v69_v8, %v65_v3 }
  0x48   :  { %729 = vmatpush1.bf16.msra.mxu1 %v1112_v31  ;;  %689 = vmatprep.subr.bf16.mxu0 %v1113_v32  ;;  %v116_v19 = vld [vmem:[#allocation2 + $0x1a8] sm:$0xff]  ;;  %v63_v31 = vld [vmem:[#allocation2] sm:$0xff]  ;;  %v122_v56 = vld [vmem:[#allocation2 + $0x1d8] sm:$0xff] }
  0x49   :  { %730 = vmatprep.subr.bf16.mxu1 %v1115_v33  ;;  %v92_v23 = vld [vmem:[#allocation2 + $0xe8] sm:$0xff]  ;;  %v67_v32 = vld [vmem:[#allocation2 + $0x20] sm:$0xff]  ;;  %v1153_v33 = vld [vmem:[#allocation5 + $0x90] ss:$8 sps:$4 sm:$0xff]   ;;  %v169_v46 = vadd.f32 %v168_v30, %v82_v27  ;;  %v154_v30 = vadd.f32 %v153_v16, %v73_v9 }
  0x4a   :  { %v120_v24 = vld [vmem:[#allocation2 + $0x1c8] sm:$0xff]  ;;  %v126_v4 = vld [vmem:[#allocation2 + $0x1f8] sm:$0xff]  ;;  %v111_v15 = vld [vmem:[#allocation2 + $0x180] sm:$0xff] }
  0x4b   :  { %690 = vmatpush2.bf16.msra.mxu0 %v1117_v34  ;;  %v1154_v34 = vld [vmem:[#allocation5 + $0x190] ss:$8 sps:$4 sm:$0xff]   ;;  %v1159_v60 = vld [vmem:[#allocation5 + $0x80] ss:$8 sps:$4 sm:$0xff]  }
  0x4c   :  { %731 = vmatpush2.bf16.msra.mxu1 %v1118_v35  ;;  %691 = vmatprep.subr.bf16.mxu0 %v1119_v36  ;;  %v124_v35 = vld [vmem:[#allocation2 + $0x1e8] sm:$0xff]  ;;  %v145_v36 = vadd.f32 %v144_v25, %v88_v12  ;;  %v77_v20 = vld [vmem:[#allocation2 + $0x70] sm:$0xff]  ;;  %v115_v27 = vld [vmem:[#allocation2 + $0x1a0] sm:$0xff] }
  0x4d   :  { %732 = vmatprep.subr.bf16.mxu1 %v1121_v37  ;;  %v196_v37 = vadd.f32 %v195_v26, %v116_v19  ;;  %v1160_v61 = vld [vmem:[#allocation5 + $0x180] ss:$8 sps:$4 sm:$0xff]   ;;  %v101_v22 = vld [vmem:[#allocation2 + $0x130] sm:$0xff] }
  0x4e   :  { %v146_v48 = vadd.f32 %v145_v36, %v92_v23  ;;  %v91_v26 = vld [vmem:[#allocation2 + $0xe0] sm:$0xff]  ;;  %v109_v36 = vld [vmem:[#allocation2 + $0x170] sm:$0xff] }
  0x4f   :  { %692 = vmatpush2.bf16.msra.mxu0 %v1123_v38  ;;  %v86_v38 = vld [vmem:[#allocation2 + $0xb8] sm:$0xff]  ;;  %v197_v49 = vadd.f32 %v196_v37, %v120_v24  ;;  %v125_v16 = vld [vmem:[#allocation2 + $0x1f0] sm:$0xff] }
  0x50   :  { %733 = vmatpush2.bf16.msra.mxu1 %v1124_v39  ;;  %693 = vmatprep.subr.bf16.mxu0 %v1125_v40  ;;  %v219_v39 = vadd.f32 %v218_v28, %v106_v21  ;;  %v71_v40 = vld [vmem:[#allocation2 + $0x40] sm:$0xff]  ;;  %v97_v21 = vld [vmem:[#allocation2 + $0x110] sm:$0xff] }
  0x51   :  { %734 = vmatprep.subr.bf16.mxu1 %v1127_v41  ;;  %v127_v41 = vadd.f32 %v67_v32, %v63_v31  ;;  %v198_v63 = vadd.f32 %v197_v49, %v124_v35  ;;  %v119_v28 = vld [vmem:[#allocation2 + $0x1c0] sm:$0xff]  ;;  %v85_v35 = vld [vmem:[#allocation2 + $0xb0] sm:$0xff]  ;;  %v205_v37 = vadd.f32 %v101_v22, %v97_v21 }
  0x53   :  { %694 = vmatpush2.bf16.msra.mxu0 %v1129_v42  ;;  %v1155_v42 = vld [vmem:[#allocation5 + $0x84] ss:$8 sps:$4 sm:$0xff]  }
  0x54   :  { %735 = vmatpush2.bf16.msra.mxu1 %v1130_v43  ;;  %695 = vmatprep.subr.bf16.mxu0 %v1131_v44  ;;  %v1157_v43 = vld [vmem:[#allocation5 + $0x184] ss:$8 sps:$4 sm:$0xff]   ;;  %v90_v44 = vld [vmem:[#allocation2 + $0xd8] sm:$0xff] }
  0x55   :  { %736 = vmatprep.subr.bf16.mxu1 %v1133_v45  ;;  %v114_v45 = vld [vmem:[#allocation2 + $0x198] sm:$0xff] }
  0x57   :  { %696 = vmatpush2.bf16.msra.mxu0 %v1135_v47  ;;  %v75_v47 = vld [vmem:[#allocation2 + $0x60] sm:$0xff] }
  0x58   :  { %737 = vmatpush2.bf16.msra.mxu1 %v1136_v50  ;;  %697 = vmatprep.subr.bf16.mxu0 %v1137_v51  ;;  %v220_v50 = vadd.f32 %v219_v39, %v110_v29  ;;  %v95_v51 = vld [vmem:[#allocation2 + $0x100] sm:$0xff]  ;;  %v105_v29 = vld [vmem:[#allocation2 + $0x150] sm:$0xff] }
  0x59   :  { %738 = vmatprep.subr.bf16.mxu1 %v1139_v52  ;;  %v99_v52 = vld [vmem:[#allocation2 + $0x120] sm:$0xff] }
  0x5a   :  { %v179_v59 = vadd.f32 %v99_v52, %v95_v51  ;;  %v221_v0 = vadd.f32 %v220_v50, %v114_v45 }
  0x5b   :  { %698 = vmatpush2.bf16.msra.mxu0 %v1141_v57  ;;  %v170_v57 = vadd.f32 %v169_v46, %v86_v38 }
  0x5c   :  { %739 = vmatpush2.bf16.msra.mxu1 %v1142_v58  ;;  %699 = vmatprep.subr.bf16.mxu0 %v1143_v62  ;;  %v128_v58 = vadd.f32 %v127_v41, %v71_v40  ;;  %v147_v62 = vrot.slane %v146_v48, 4  ;;  %v180_v7 = vadd.f32 %v179_v59, %v103_v53  ;;  %v222_v12 = vadd.f32 %v221_v0, %v118_v55  ;;  %v123_v41 = vld [vmem:[#allocation2 + $0x1e0] sm:$0xff] }
  0x5d   :  { %740 = vmatprep.subr.bf16.mxu1 %v1145_v6  ;;  %v171_v5 = vadd.f32 %v170_v57, %v90_v44 }
  0x5e   :  { %v129_v6 = vadd.f32 %v128_v58, %v75_v47  ;;  %v181_v19 = vadd.f32 %v180_v7, %v107_v2  ;;  %v223_v25 = vadd.f32 %v222_v12, %v122_v56  ;;  %v113_v47 = vld [vmem:[#allocation2 + $0x190] sm:$0xff] }
  0x5f   :  { %700 = vmatpush2.bf16.msra.mxu0 %v1147_v10  ;;  %v148_v10 = vadd.f32 %v147_v62, %v146_v48  ;;  %v206_v48 = vadd.f32 %v205_v37, %v105_v29  ;;  %v89_v56 = vld [vmem:[#allocation2 + $0xd0] sm:$0xff] }
  0x60   :  { %741 = vmatpush2.bf16.msra.mxu1 %v1148_v11  ;;  %701 = vmatprep.subr.bf16.mxu0 %v1149_v17  ;;  %v199_v11 = vrot.slane %v198_v63, 4  ;;  %v172_v17 = vadd.f32 %v171_v5, %v94_v54  ;;  %v224_v40 = vadd.f32 %v223_v25, %v126_v4  ;;  %v93_v2 = vld [vmem:[#allocation2 + $0xf0] sm:$0xff] }
  0x61   :  { %742 = vmatprep.subr.bf16.mxu1 %v1151_v18  ;;  %v130_v18 = vadd.f32 %v129_v6, %v79_v1  ;;  %v149_v23 = vrot.slane %v148_v10, 2  ;;  %v207_v57 = vadd.f32 %v206_v48, %v109_v36  ;;  %v121_v7 = vld [vmem:[#allocation2 + $0x1d0] sm:$0xff] }
  0x62   :  { %v200_v24 = vadd.f32 %v199_v11, %v198_v63  ;;  %v173_v31 = vrot.slane %v172_v17, 4  ;;  %v225_v51 = vrot.slane %v224_v40, 4 }
  0x63   :  { %702 = vmatpush2.bf16.msra.mxu0 %v1153_v33  ;;  %v131_v32 = vadd.f32 %v130_v18, %v83_v13  ;;  %v182_v33 = vadd.f32 %v181_v19, %v111_v15  ;;  %v150_v38 = vadd.f32 %v149_v23, %v148_v10  ;;  %v208_v3 = vadd.f32 %v207_v57, %v113_v47 }
  0x64   :  { %743 = vmatpush2.bf16.msra.mxu1 %v1154_v34  ;;  %703 = vmatprep.subr.bf16.mxu0 %v1155_v42  ;;  %v81_v34 = vld [vmem:[#allocation2 + $0x90] sm:$0xff]  ;;  %v201_v39 = vrot.slane %v200_v24, 2  ;;  %v155_v42 = vadd.f32 %v154_v30, %v77_v20  ;;  %v174_v44 = vadd.f32 %v173_v31, %v172_v17 }
  0x65   :  { %744 = vmatprep.subr.bf16.mxu1 %v1157_v43  ;;  %v1161_v43 = vld [vmem:[#allocation7 + $0x78] sm:$0xff]   ;;  %v132_v45 = vadd.f32 %v131_v32, %v87_v14  ;;  %v183_v46 = vadd.f32 %v182_v33, %v115_v27  ;;  %v151_v49 = vrot.slane %v150_v38, 1 }
  0x66   :  { %v202_v50 = vadd.f32 %v201_v39, %v200_v24  ;;  %v156_v52 = vadd.f32 %v155_v42, %v81_v34  ;;  %v175_v53 = vrot.slane %v174_v44, 2 }
  0x67   :  { %704 = vmatpush2.bf16.msra.mxu0 %v1159_v60  ;;  %v133_v54 = vadd.f32 %v132_v45, %v91_v26  ;;  %v184_v55 = vadd.f32 %v183_v46, %v119_v28  ;;  %v152_v58 = vadd.f32 %v151_v49, %v150_v38  ;;  %v226_v60 = vadd.f32 %v225_v51, %v224_v40 }
  0x68   :  { %745 = vmatpush2.bf16.msra.mxu1 %v1160_v61  ;;  %1033 = vmatprep.subr.bf16.mxu0 %v1161_v43  ;;  %v203_v59 = vrot.slane %v202_v50, 1  ;;  %v117_v61 = vld [vmem:[#allocation2 + $0x1b0] sm:$0xff]  ;;  %v157_v62 = vadd.f32 %v156_v52, %v85_v35  ;;  %v176_v63 = vadd.f32 %v175_v53, %v174_v44 }
  0x69   :  { %v134_v0 = vrot.slane %v133_v54, 4  ;;  %v185_v1 = vadd.f32 %v184_v55, %v123_v41  ;;  %v233_v5 = vmul.f32 0.015625, %v152_v58  ;;  %v227_v6 = vrot.slane %v226_v60, 2 }
  0x6a   :  { %v204_v4 = vadd.f32 %v203_v59, %v202_v50  ;;  %v158_v8 = vadd.f32 %v157_v62, %v89_v56  ;;  %v177_v9 = vrot.slane %v176_v63, 1  ;;  %v209_v12 = vadd.f32 %v208_v3, %v117_v61 }
  0x6b   :  { %v135_v10 = vadd.f32 %v134_v0, %v133_v54  ;;  %v186_v11 = vrot.slane %v185_v1, 4  ;;  %v241_v14 = vpack.c.bf16 %v233_v5, %v233_v5  ;;  %v228_v15 = vadd.f32 %v227_v6, %v226_v60  ;;  %v1163_v5 = vld [vmem:[#allocation7 + $0x70] sm:$0xff]  }
  0x6c   :  { %v237_v13 = vmul.f32 0.015625, %v204_v4  ;;  %v159_v17 = vadd.f32 %v158_v8, %v93_v2  ;;  %v178_v18 = vadd.f32 %v177_v9, %v176_v63  ;;  %v210_v21 = vadd.f32 %v209_v12, %v121_v7  ;;  %v1162_v2 = vld [vmem:[#allocation7 + $0x38] sm:$0xff]   ;;  %v1164_v8 = vld [vmem:[#allocation7 + $0x30] sm:$0xff]  }
  0x6d   :  { %v136_v19 = vrot.slane %v135_v10, 2  ;;  %v187_v20 = vadd.f32 %v186_v11, %v185_v1  ;;  %v333_v23 = vunpack.c.l.b16 %v241_v14  ;;  %v229_v24 = vrot.slane %v228_v15, 1  ;;  %v1167_v14 = vld [vmem:[#allocation7 + $0x60] sm:$0xff]  }
  0x6e   :  { %v245_v22 = vpack.c.bf16 %v237_v13, %v237_v13  ;;  %v160_v25 = vrot.slane %v159_v17, 4  ;;  %v235_v26 = vmul.f32 0.015625, %v178_v18  ;;  %v211_v29 = vadd.f32 %v210_v21, %v125_v16  ;;  %v1166_v13 = vld [vmem:[#allocation7 + $0x28] sm:$0xff]   ;;  %v1169_v16 = vld [vmem:[#allocation7 + $0x58] sm:$0xff]   ;;  %v1171_v18 = vld [vmem:[#allocation7 + $0x50] sm:$0xff]  }
  0x6f   :  { %v137_v27 = vadd.f32 %v136_v19, %v135_v10  ;;  %v188_v28 = vrot.slane %v187_v20, 2  ;;  %v230_v31 = vadd.f32 %v229_v24, %v228_v15  ;;  %v1165_v10 = vld [vmem:[#allocation7 + $0x68] sm:$0xff]   ;;  %v1168_v15 = vld [vmem:[#allocation7 + $0x20] sm:$0xff]   ;;  %v1172_v19 = vld [vmem:[#allocation7 + $0x10] sm:$0xff]   ;;  %v314_v24 = vlaneseq }
  0x70   :  { %v337_v30 = vunpack.c.l.b16 %v245_v22  ;;  %v161_v32 = vadd.f32 %v160_v25, %v159_v17  ;;  %v243_v33 = vpack.c.bf16 %v235_v26, %v235_v26  ;;  %v212_v36 = vrot.slane %v211_v29, 4  ;;  %v1170_v17 = vld [vmem:[#allocation7 + $0x18] sm:$0xff]   ;;  %v1174_v21 = vld [vmem:[#allocation7 + $0x8] sm:$0xff]   ;;  %v1175_v22 = vld [vmem:[#allocation7 + $0x40] sm:$0xff]  }
  0x71   :  { %v138_v34 = vrot.slane %v137_v27, 1  ;;  %v189_v35 = vadd.f32 %v188_v28, %v187_v20  ;;  %v239_v38 = vmul.f32 0.015625, %v230_v31  ;;  %v1173_v20 = vld [vmem:[#allocation7 + $0x48] sm:$0xff]   ;;  %v315_v25 = vshrl.u32 %v314_v24, 7 }
  0x72   :  { %v342_v37 = vsel %vm340_vm0, %v337_v30, %v333_v23  ;;  %v162_v39 = vrot.slane %v161_v32, 2  ;;  %v335_v44 = vunpack.c.l.b16 %v243_v33  ;;  %v213_v46 = vadd.f32 %v212_v36, %v211_v29  ;;  %v1176_v23 = vld [vmem:[#allocation7] sm:$0xff]  }
  0x73   :  { %v346_v40 = vpack.c.b16 %v342_v37, %v342_v37  ;;  %v139_v41 = vadd.f32 %v138_v34, %v137_v27  ;;  %v190_v42 = vrot.slane %v189_v35, 1  ;;  %v247_v43 = vpack.c.bf16 %v239_v38, %v239_v38  ;;  %v312_v27 = vld [vmem:[%s1327_s2] sm:$0x3] }
  0x74   :  { %v163_v45 = vadd.f32 %v162_v39, %v161_v32  ;;  %v214_v51 = vrot.slane %v213_v46, 2  ;;  %v316_v26 = vsub.s32 0, %v315_v25  ;;  %v320_v28 = vsub.s32 1, %v315_v25 }
  0x75   :  { %705 = vmatprep.mubr.bf16.mxu0 %v346_v40  ;;  %v191_v47 = vadd.f32 %v190_v42, %v189_v35  ;;  %v232_v48 = vmul.f32 0.015625, %v139_v41  ;;  %v339_v49 = vunpack.c.l.b16 %v247_v43 }
  0x76   :  { %v164_v50 = vrot.slane %v163_v45, 1  ;;  %v215_v56 = vadd.f32 %v214_v51, %v213_v46  ;;  %v317_v29 = vrot.slane %v312_v27, %v316_v26  ;;  %v321_v31 = vrot.slane %v312_v27, %v320_v28 }
  0x77   :  { %v236_v52 = vmul.f32 0.015625, %v191_v47  ;;  %v240_v53 = vpack.c.bf16 %v232_v48, %v232_v48  ;;  %v344_v54 = vsel %vm340_vm0, %v339_v49, %v335_v44  ;;  %v1016_v48 = vld [vmem:[%s1329_s4] ss:$0 sm:$0xff] }
  0x78   :  { %v165_v55 = vadd.f32 %v164_v50, %v163_v45  ;;  %v348_v57 = vpack.c.b16 %v344_v54, %v344_v54  ;;  %v216_v60 = vrot.slane %v215_v56, 1 }
  0x79   :  { %v244_v58 = vpack.c.bf16 %v236_v52, %v236_v52  ;;  %v332_v59 = vunpack.c.l.b16 %v240_v53 }
  0x7a   :  { %v234_v61 = vmul.f32 0.015625, %v165_v55  ;;  %746 = vmatprep.mubr.bf16.mxu1 %v348_v57  ;;  %v217_v63 = vadd.f32 %v216_v60, %v215_v56 }
  0x7b   :  { %v336_v62 = vunpack.c.l.b16 %v244_v58 }
  0x7c   :  { %v242_v0 = vpack.c.bf16 %v234_v61, %v234_v61  ;;  %v238_v4 = vmul.f32 0.015625, %v217_v63 }
  0x7d   :  { %v341_v1 = vsel %vm340_vm0, %v336_v62, %v332_v59 }
  0x7e   :  { %v345_v3 = vpack.c.b16 %v341_v1, %v341_v1  ;;  %v246_v6 = vpack.c.bf16 %v238_v4, %v238_v4  ;;  %v334_v7 = vunpack.c.l.b16 %v242_v0 }
  0x80   :  { %706 = vmatmul.mubr.bf16.vlgmr.msra.gmra.mxu0 %v345_v3  ;;  %v338_v9 = vunpack.c.l.b16 %v246_v6 }
  0x81   :  { %1034 = vmatpush3.bf16.msra.mxu0 %v1162_v2 }
  0x82   :  { %1035 = vmatprep.subr.bf16.mxu0 %v1163_v5  ;;  %v343_v11 = vsel %vm340_vm0, %v338_v9, %v334_v7 }
  0x83   :  { %v347_v12 = vpack.c.b16 %v343_v11, %v343_v11 }
  0x85   :  { %1036 = vmatpush3.bf16.msra.mxu0 %v1164_v8  ;;  %747 = vmatmul.mubr.bf16.vlgmr.msra.gmra.mxu1 %v347_v12 }
  0x86   :  { %1037 = vmatprep.subr.bf16.mxu0 %v1165_v10 }
  0x89   :  { %1038 = vmatpush3.bf16.msra.mxu0 %v1166_v13 }
  0x8a   :  { %1039 = vmatprep.subr.bf16.mxu0 %v1167_v14 }
  0x8d   :  { %1040 = vmatpush3.bf16.msra.mxu0 %v1168_v15 }
  0x8e   :  { %1041 = vmatprep.subr.bf16.mxu0 %v1169_v16 }
  0x91   :  { %1042 = vmatpush3.bf16.msra.mxu0 %v1170_v17 }
  0x92   :  { %1043 = vmatprep.subr.bf16.mxu0 %v1171_v18 }
  0x95   :  { %1044 = vmatpush3.bf16.msra.mxu0 %v1172_v19 }
  0x96   :  { %1045 = vmatprep.subr.bf16.mxu0 %v1173_v20 }
  0x99   :  { %1046 = vmatpush3.bf16.msra.mxu0 %v1174_v21 }
  0x9a   :  { %1047 = vmatprep.subr.bf16.mxu0 %v1175_v22 }
  0x9d   :  { %1048 = vmatpush3.bf16.msra.mxu0 %v1176_v23 }
 0x140   :  { %v707_v30 = vpop.f32.mrf.mxu0 }
 0x141   :  { %v708_v33 = vadd.f32 %v707_v30, %v317_v29 }
 0x142   :  { %v709_v32 = vpop.f32.mrf.mxu0 }
 0x143   :  { %v710_v35 = vadd.f32 %v709_v32, %v321_v31 }
 0x144   :  { %v711_v34 = vpop.f32.mrf.mxu0 }
 0x145   :  { %v748_v37 = vpop.f32.mrf.mxu1 }
 0x146   :  { %v712_v36 = vpop.f32.mrf.mxu0  ;;  %v749_v38 = vadd.f32 %v748_v37, %v708_v33 }
 0x147   :  { %v750_v39 = vpop.f32.mrf.mxu1 }
 0x148   :  { %v751_v40 = vadd.f32 %v750_v39, %v710_v35  ;;  %v755_v41 = vmax.f32 %v749_v38, 0.0 }
 0x149   :  { %v752_v42 = vpop.f32.mrf.mxu1 }
 0x14a   :  { %v756_v43 = vmax.f32 %v751_v40, 0.0  ;;  %v757_v46 = vpack.c.bf16 %v755_v41, %v755_v41 }
 0x14b   :  { %v753_v44 = vpop.f32.mrf.mxu1 }
 0x14c   :  { %v758_v45 = vpack.c.bf16 %v756_v43, %v756_v43 }
 0x14e   :  { %926 = vmatprep.mubr.bf16.mxu0 %v758_v45 }
 0x14f   :  { %927 = vmatmul.mubr.bf16.vlgmr.msra.gmra.mxu0 %v757_v46 }
 0x20f   :  { %v1049_v47 = vpop.f32.mrf.mxu0 }
 0x211   :  { %v1050_v49 = vpop.f32.mrf.mxu0 }
 0x212   :  { %v1051_v50 = vadd.f32 %v1050_v49, %v1049_v47 }
 0x213   :  { %v1052_v51 = vpop.f32.mrf.mxu0 }
 0x214   :  { %v929_v52 = vadd.f32 %v1051_v50, %v1016_v48 }
 0x215   :  { %v1053_v53 = vpop.f32.mrf.mxu0 }
 0x216   :  { %v934_v54 = vmax.f32 %v929_v52, 0.0 }
 0x218   :  { %935 = vst [vmem:[#allocation8] sm:$0x3] %v934_v54 }
 0x219   :  { %1248 = shalt.err (!%p1245_p5)
}
 0x21a   :  { %945 = dma.vmem_to_hbm [thread:$0]  %s943_s15, 32, %s1330_s5, [#allocation4]  }
 0x21b   :  { %1261 = dma.done.wait [#allocation4], 32  }
 0x21c   :  { %1262 = vsyncadd [#allocation4], 4294967264 }
 0x21d   :  { %949 = vsyncpa [#allocation3], 1 }
 0x21e   :  { %950 = vsyncpa [#allocation6], 1 }
 0x21f   :  { %951 = vsyncpa [#allocation4], 1 }

</bundles_post_ra>
